<compile_context>
chip_gen: v7x
topology: tpu7x:2x2x1
jax: 0.10.0
libtpu: 0.0.40
codegen_flags: <defaults>
</compile_context>

<pallas_src>
import jax
import jax.numpy as jnp
from jax.experimental import pallas as pl
from jax.experimental.pallas import tpu as pltpu


def _round_up(n, m):
    return ((n + m - 1) // m) * m


def prepare_params(w1, b1, w2, b2, *, compute_dtype=jnp.bfloat16):
    """One-time param prep (call at init, NOT per forward).

    Pads the hidden/output (N) dims to lane multiples of 128 so in-kernel
    matmul outputs and stores are lane-dense, and casts weights to the MXU
    compute dtype.  Padded columns carry zero weights/biases, so the unpadded
    slice of the result is exact.  The contraction dim d_in is left unpadded.
    """
    d_in, d_hid = w1.shape
    d_out = w2.shape[1]
    d_hid_p = _round_up(d_hid, 128)
    d_out_p = _round_up(d_out, 128)
    b1 = jnp.asarray(b1).reshape(1, -1)
    b2 = jnp.asarray(b2).reshape(1, -1)
    cd = jnp.dtype(compute_dtype)
    return {
        "w1": jnp.pad(w1, ((0, 0), (0, d_hid_p - d_hid))).astype(cd),
        "b1": jnp.pad(b1, ((0, 0), (0, d_hid_p - d_hid))).astype(jnp.float32),
        "w2": jnp.pad(w2, ((0, d_hid_p - d_hid), (0, d_out_p - d_out))).astype(cd),
        "b2": jnp.pad(b2, ((0, 0), (0, d_out_p - d_out))).astype(jnp.float32),
        "d_out": d_out,
        "compute_dtype": cd,
    }


def _make_kernel(compute_dtype, d_hid_p, hid_chunk):
    n_chunks = d_hid_p // hid_chunk

    def kernel(x_ref, w1_ref, b1_ref, w2_ref, b2_ref, o_ref):
        # Cast the activation tile in-kernel (no wrapper-side cast pass).
        x = x_ref[...].astype(compute_dtype)
        if n_chunks == 1:
            h = jnp.maximum(
                jnp.dot(x, w1_ref[...], preferred_element_type=jnp.float32)
                + b1_ref[...], 0.0)
            y = jnp.dot(h.astype(compute_dtype), w2_ref[...],
                        preferred_element_type=jnp.float32)
        else:
            # Hidden-dim chunking: bounds the f32 intermediate (and its
            # compute-dtype copy) to (tb, hid_chunk) instead of (tb, d_hid_p).
            # Offsets are static multiples of 128 -> zero-cost ref views.
            y = jnp.zeros((x_ref.shape[0], o_ref.shape[-1]), jnp.float32)
            for c in range(n_chunks):
                lo, hi = c * hid_chunk, (c + 1) * hid_chunk
                h = jnp.maximum(
                    jnp.dot(x, w1_ref[:, lo:hi],
                            preferred_element_type=jnp.float32)
                    + b1_ref[:, lo:hi], 0.0)
                y = y + jnp.dot(h.astype(compute_dtype), w2_ref[lo:hi, :],
                                preferred_element_type=jnp.float32)
        o_ref[...] = jax.nn.sigmoid(y + b2_ref[...]).astype(o_ref.dtype)

    return kernel


def mlp_rep_encoder(x, params, *, batch_tile=None, out_dtype=None,
                    hidden_chunk=2048, x_buffers=2):
    """x: [B, d_in]; params: output of prepare_params() -> [B, d_out]."""
    w1, b1, w2, b2 = params["w1"], params["b1"], params["w2"], params["b2"]
    d_out = params["d_out"]
    compute_dtype = params["compute_dtype"]
    out_dtype = x.dtype if out_dtype is None else out_dtype

    B, d_in = x.shape
    assert w1.shape[0] == d_in, (w1.shape, d_in)
    d_hid_p = w1.shape[1]
    d_out_p = w2.shape[1]

    # Generation-aware knobs (v7x: 64 MiB VMEM, 2 TCs; v5e/v6e: 128 MiB, 1 TC).
    try:
        vmem_cap = getattr(pltpu.get_tpu_info(), "vmem_capacity_bytes",
                           64 * 2 ** 20)
    except Exception:  # conservative fallback works on every generation
        vmem_cap = 64 * 2 ** 20
    max_tile = 1024 if vmem_cap >= 128 * 2 ** 20 else 512

    # Batch tile: multiple of the sublane pack for x's dtype; prefer >=2 grid
    # steps so dimension_semantics=("parallel",) can shard across v7x cores.
    sub = max(8, 32 // jnp.dtype(x.dtype).itemsize)
    if batch_tile is None:
        tb = min(max_tile, _round_up(B, sub))
        if pl.cdiv(B, tb) < 2 and B > 2 * sub:
            tb = _round_up(pl.cdiv(B, 2), sub)
    else:
        tb = _round_up(min(batch_tile, _round_up(B, sub)), sub)
    grid = (pl.cdiv(B, tb),)

    # Hidden chunk: largest multiple of 128 <= hidden_chunk dividing d_hid_p.
    hid_chunk = d_hid_p
    if d_hid_p > hidden_chunk:
        hc = max(128, (hidden_chunk // 128) * 128)
        while d_hid_p % hc != 0:
            hc -= 128
        hid_chunk = hc

    # VMEM budget: pipelined x/out tiles + resident weights/biases + f32
    # intermediates, 1.5x headroom, capped at 85% of this chip's VMEM.
    xb = jnp.dtype(x.dtype).itemsize
    cb = jnp.dtype(compute_dtype).itemsize
    ob = jnp.dtype(out_dtype).itemsize
    vmem_est = (x_buffers * tb * d_in * xb            # x tiles
                + 2 * tb * d_out_p * ob               # out tile, double-buffered
                + d_in * d_hid_p * cb                 # W1 resident (Buffered(1))
                + d_hid_p * d_out_p * cb              # W2 resident (Buffered(1))
                + 4 * (d_hid_p + d_out_p)             # biases (f32)
                + tb * d_in * cb                      # x cast copy
                + (4 + cb) * tb * hid_chunk           # h f32 + compute-dtype copy
                + 4 * tb * d_out_p)                   # y accumulator (f32)
    vmem_limit = int(min(max(int(1.5 * vmem_est), 16 * 2 ** 20),
                         int(0.85 * vmem_cap)))

    cost = pl.CostEstimate(
        flops=2 * B * (d_in * d_hid_p + d_hid_p * d_out_p),
        transcendentals=B * d_out_p,
        bytes_accessed=(B * d_in * xb + d_in * d_hid_p * cb
                        + d_hid_p * d_out_p * cb + 4 * (d_hid_p + d_out_p)
                        + B * d_out_p * ob))

    kernel = _make_kernel(compute_dtype, d_hid_p, hid_chunk)
    out_p = pl.pallas_call(
        kernel,
        out_shape=jax.ShapeDtypeStruct((B, d_out_p), out_dtype),
        grid_spec=pltpu.PrefetchScalarGridSpec(
            num_scalar_prefetch=0,
            grid=grid,
            in_specs=[
                # x tile: original dtype, unpadded d_in (== full array dim).
                pl.BlockSpec((tb, d_in), lambda i: (i, 0),
                             pipeline_mode=pl.Buffered(x_buffers)),
                # Grid-invariant weights/biases: single-buffered, VMEM-resident.
                pl.BlockSpec((d_in, d_hid_p), lambda i: (0, 0),
                             pipeline_mode=pl.Buffered(1)),
                pl.BlockSpec((1, d_hid_p), lambda i: (0, 0),
                             pipeline_mode=pl.Buffered(1)),
                pl.BlockSpec((d_hid_p, d_out_p), lambda i: (0, 0),
                             pipeline_mode=pl.Buffered(1)),
                pl.BlockSpec((1, d_out_p), lambda i: (0, 0),
                             pipeline_mode=pl.Buffered(1)),
            ],
            out_specs=pl.BlockSpec((tb, d_out_p), lambda i: (i, 0)),
        ),
        compiler_params=pltpu.CompilerParams(
            dimension_semantics=("parallel",),
            vmem_limit_bytes=vmem_limit),
        cost_estimate=cost,
    )(x, w1, b1, w2, b2)

    return out_p if d_out_p == d_out else out_p[:, :d_out]


def init_params(key, input_size, hidden_size, output_size, dtype=jnp.float32):
    """Deterministic init mirroring nn.Linear (weights stored [in, out])."""
    k1, k2, k3, k4 = jax.random.split(key, 4)
    lim1 = 1.0 / jnp.sqrt(input_size)
    lim2 = 1.0 / jnp.sqrt(hidden_size)
    w1 = jax.random.uniform(k1, (input_size, hidden_size), dtype, -lim1, lim1)
    b1 = jax.random.uniform(k2, (1, hidden_size), dtype, -lim1, lim1)
    w2 = jax.random.uniform(k3, (hidden_size, output_size), dtype, -lim2, lim2)
    b2 = jax.random.uniform(k4, (1, output_size), dtype, -lim2, lim2)
    return w1, b1, w2, b2


def _reference(x, w1, b1, w2, b2):
    return jax.nn.sigmoid(jnp.maximum(x @ w1 + b1, 0.0) @ w2 + b2)


if __name__ == "__main__":
    key = jax.random.PRNGKey(0)

    # --- Test 1: small shapes, single-shot kernel path -----------------------
    batch, input_size, hidden_size, output_size = 8, 32, 64, 32
    kx, kp, kx2, kp2 = jax.random.split(key, 4)
    x = jax.random.normal(kx, (batch, input_size), jnp.float32)
    w1, b1, w2, b2 = init_params(kp, input_size, hidden_size, output_size)

    params = prepare_params(w1, b1, w2, b2, compute_dtype=jnp.bfloat16)  # once
    out = jax.block_until_ready(mlp_rep_encoder(x, params))

    ref = _reference(x, w1, b1, w2, b2)
    assert out.shape == (batch, output_size), out.shape
    assert out.dtype == x.dtype
    err = float(jnp.max(jnp.abs(out - ref)))
    assert jnp.allclose(out, ref, atol=2e-2, rtol=2e-2), err

    # --- Test 2: multi-step (ragged) batch grid + hidden-dim chunking --------
    batch2, in2, hid2, out2 = 20, 48, 256, 16
    x2 = jax.random.normal(kx2, (batch2, in2), jnp.float32)
    w1b, b1b, w2b, b2b = init_params(kp2, in2, hid2, out2)
    params2 = prepare_params(w1b, b1b, w2b, b2b, compute_dtype=jnp.bfloat16)
    out_b = jax.block_until_ready(
        mlp_rep_encoder(x2, params2, batch_tile=8, hidden_chunk=128))
    ref_b = _reference(x2, w1b, b1b, w2b, b2b)
    assert out_b.shape == (batch2, out2), out_b.shape
    err2 = float(jnp.max(jnp.abs(out_b - ref_b)))
    assert jnp.allclose(out_b, ref_b, atol=2e-2, rtol=2e-2), err2

    print("KERNEL_OK")
</pallas_src>

<mosaic_0001>
module attributes {stable_mosaic.version = 11 : i64} {
  func.func @kernel(%arg0: i32, %arg1: memref<8x32xf32, #tpu.memory_space<vmem>>, %arg2: memref<32x128xbf16, #tpu.memory_space<vmem>>, %arg3: memref<1x128xf32, #tpu.memory_space<vmem>>, %arg4: memref<128x128xbf16, #tpu.memory_space<vmem>>, %arg5: memref<1x128xf32, #tpu.memory_space<vmem>>, %arg6: memref<8x128xf32, #tpu.memory_space<vmem>>) attributes {dimension_semantics = [#tpu.dimension_semantics<parallel>], iteration_bounds = array<i64: 1>, scalar_prefetch = 0 : i64, scratch_operands = 0 : i64, tpu.core_type = #tpu.core_type<tc>, window_params = [{pipeline_mode = #tpu.pipeline_mode<double_buffered>, transform_indices = @transform_0, window_bounds = array<i64: 8, 32>}, {pipeline_mode = #tpu.pipeline_mode<synchronous>, transform_indices = @transform_1, window_bounds = array<i64: 32, 128>}, {pipeline_mode = #tpu.pipeline_mode<synchronous>, transform_indices = @transform_2, window_bounds = array<i64: 1, 128>}, {pipeline_mode = #tpu.pipeline_mode<synchronous>, transform_indices = @transform_3, window_bounds = array<i64: 128, 128>}, {pipeline_mode = #tpu.pipeline_mode<synchronous>, transform_indices = @transform_4, window_bounds = array<i64: 1, 128>}, {transform_indices = @transform_5, window_bounds = array<i64: 8, 128>}]} {
    %c0 = arith.constant 0 : index
    %c0_0 = arith.constant 0 : index
    %0 = vector.load %arg1[%c0, %c0_0] : memref<8x32xf32, #tpu.memory_space<vmem>>, vector<8x32xf32>
    %1 = arith.truncf %0 : vector<8x32xf32> to vector<8x32xbf16>
    %c0_1 = arith.constant 0 : index
    %c0_2 = arith.constant 0 : index
    %2 = vector.load %arg2[%c0_1, %c0_2] : memref<32x128xbf16, #tpu.memory_space<vmem>>, vector<32x128xbf16>
    %cst = arith.constant dense<0.000000e+00> : vector<8x128xf32>
    %3 = tpu.matmul %1, %2, %cst {dimension_numbers = #tpu.dot_dimension_numbers<[1], [0], [0], [1], [0, 0, 1, 1], [], []>} : vector<8x32xbf16>, vector<32x128xbf16>, vector<8x128xf32> -> vector<8x128xf32>
    %c0_3 = arith.constant 0 : index
    %c0_4 = arith.constant 0 : index
    %4 = vector.load %arg3[%c0_3, %c0_4] : memref<1x128xf32, #tpu.memory_space<vmem>>, vector<1x128xf32>
    %5 = vector.broadcast %4 : vector<1x128xf32> to vector<8x128xf32>
    %6 = arith.addf %3, %5 : vector<8x128xf32>
    %cst_5 = arith.constant 0.000000e+00 : f32
    %7 = vector.broadcast %cst_5 : f32 to vector<8x128xf32>
    %8 = arith.maximumf %6, %7 : vector<8x128xf32>
    %9 = arith.truncf %8 : vector<8x128xf32> to vector<8x128xbf16>
    %c0_6 = arith.constant 0 : index
    %c0_7 = arith.constant 0 : index
    %10 = vector.load %arg4[%c0_6, %c0_7] : memref<128x128xbf16, #tpu.memory_space<vmem>>, vector<128x128xbf16>
    %cst_8 = arith.constant dense<0.000000e+00> : vector<8x128xf32>
    %11 = tpu.matmul %9, %10, %cst_8 {dimension_numbers = #tpu.dot_dimension_numbers<[1], [0], [0], [1], [0, 0, 1, 1], [], []>} : vector<8x128xbf16>, vector<128x128xbf16>, vector<8x128xf32> -> vector<8x128xf32>
    %c0_9 = arith.constant 0 : index
    %c0_10 = arith.constant 0 : index
    %12 = vector.load %arg5[%c0_9, %c0_10] : memref<1x128xf32, #tpu.memory_space<vmem>>, vector<1x128xf32>
    %13 = vector.broadcast %12 : vector<1x128xf32> to vector<8x128xf32>
    %14 = arith.addf %11, %13 : vector<8x128xf32>
    %15 = arith.negf %14 : vector<8x128xf32>
    %16 = math.exp %15 : vector<8x128xf32>
    %cst_11 = arith.constant 1.000000e+00 : f32
    %17 = vector.broadcast %cst_11 : f32 to vector<8x128xf32>
    %18 = arith.addf %17, %16 : vector<8x128xf32>
    %19 = arith.divf %17, %18 : vector<8x128xf32>
    %c0_12 = arith.constant 0 : index
    %c0_13 = arith.constant 0 : index
    %20 = vector.load %arg6[%c0_12, %c0_13] : memref<8x128xf32, #tpu.memory_space<vmem>>, vector<8x128xf32>
    tpu.vector_store %arg6[%c0_12, %c0_13], %19 {strides = array<i32>} : memref<8x128xf32, #tpu.memory_space<vmem>>, vector<8x128xf32>,
    return
  }
  func.func @transform_0(%arg0: i32) -> (i32, i32) {
    %c0_i32 = arith.constant 0 : i32
    %c0_i32_0 = arith.constant 0 : i32
    return %arg0, %c0_i32 : i32, i32
  }
  func.func @transform_1(%arg0: i32) -> (i32, i32) {
    %c0_i32 = arith.constant 0 : i32
    %c0_i32_0 = arith.constant 0 : i32
    %c0_i32_1 = arith.constant 0 : i32
    return %c0_i32, %c0_i32_0 : i32, i32
  }
  func.func @transform_2(%arg0: i32) -> (i32, i32) {
    %c0_i32 = arith.constant 0 : i32
    %c0_i32_0 = arith.constant 0 : i32
    %c0_i32_1 = arith.constant 0 : i32
    return %c0_i32, %c0_i32_0 : i32, i32
  }
  func.func @transform_3(%arg0: i32) -> (i32, i32) {
    %c0_i32 = arith.constant 0 : i32
    %c0_i32_0 = arith.constant 0 : i32
    %c0_i32_1 = arith.constant 0 : i32
    return %c0_i32, %c0_i32_0 : i32, i32
  }
  func.func @transform_4(%arg0: i32) -> (i32, i32) {
    %c0_i32 = arith.constant 0 : i32
    %c0_i32_0 = arith.constant 0 : i32
    %c0_i32_1 = arith.constant 0 : i32
    return %c0_i32, %c0_i32_0 : i32, i32
  }
  func.func @transform_5(%arg0: i32) -> (i32, i32) {
    %c0_i32 = arith.constant 0 : i32
    %c0_i32_0 = arith.constant 0 : i32
    return %arg0, %c0_i32 : i32, i32
  }
}

</mosaic_0001>

<bundles_post_ra>
// kernel: tpu_custom_call.1
= control target key start
LH: loop header
LB: loop body
LE: loop exit
PB: predicated region body
PF: predicated region fallthrough
CT: control target
= control target key end

     0   :  { %10 = vsyncpa [#allocation3], 0  ;;  %s534_s0 = inlined_call_operand.hbm [shape: f32[8,32], index: 0, kind: input, shape index: {}]   ;;  %s535_s1 = inlined_call_operand.hbm [shape: bf16[32,128], index: 1, kind: input, shape index: {}]   ;;  %s536_s2 = inlined_call_operand.vmem [shape: f32[1,128], index: 2, kind: input, shape index: {}]   ;;  %s537_s3 = inlined_call_operand.hbm [shape: bf16[128,128], index: 3, kind: input, shape index: {}]   ;;  %s538_s4 = inlined_call_operand.vmem [shape: f32[1,128], index: 4, kind: input, shape index: {}]   ;;  %s539_s5 = inlined_call_operand.hbm [shape: f32[8,128], index: 5, kind: output, shape index: {}]  }
   0x1   :  { %11 = vsyncpa [#allocation6], 0 }
   0x2   :  { %12 = vsyncpa [#allocation4], 0  ;;  %s436_s18 = smov [#allocation5]   ;;  %s342_s22 = scalar_lea.hbm %s535_s1, 256 }
   0x3   :  { %s28_s19 = sshll.u32 %s436_s18, 4  ;;  %p343_p0 = scmp.ne.s32.totalorder %s535_s1, %s342_s22  ;;  %s29_s19 = int_to_ptr.vmem [resolvable:$true] %s28_s19 }
   0x4   :  { %p346_p1 = scmp.lt.u32.totalorder %s342_s22, %s535_s1 }
   0x6   :  { %p348_p2 = pnand %p346_p1, %p343_p0 }
   0x8   :  { %351 = shalt.err (!%p348_p2)
}
   0x9   :  { %s352_s27 = scalar_lea.vmem %s29_s19, 256  ;;  %p357_p4 = scmp.lt.s32.totalorder %s29_s19, %s29_s19 }
   0xa   :  { %p353_p3 = scmp.ne.s32.totalorder %s29_s19, %s352_s27  ;;  %p358_p5 = scmp.lt.s32.totalorder %s352_s27, %s352_s27 }
   0xc   :  { %p359_p6 = por %p358_p5, %p357_p4 }
   0xe   :  { %p360_p7 = pnand %p359_p6, %p353_p3 }
  0x10   :  { %363 = shalt.err (!%p360_p7)
}
  0x11   :  { %s437_s28 = smov 64   ;;  %s438_s29 = smov 4  }
  0x12   :  { %34 = dma.hbm_to_vmem [thread:$0]  %s535_s1, 256, %s29_s19, [#allocation6], %s437_s28, %s437_s28, %s438_s29  }
  0x13   :  { %s439_s7 = smov [#allocation2]   ;;  %s440_s9 = smov [#allocation7]  }
  0x14   :  { %s19_s8 = sshll.u32 %s439_s7, 4  ;;  %s42_s10 = sshll.u32 %s440_s9, 4  ;;  %s20_s8 = int_to_ptr.vmem [resolvable:$true] %s19_s8  ;;  %s43_s10 = int_to_ptr.vmem [resolvable:$true] %s42_s10 }
  0x15   :  { %s364_s13 = scalar_lea.hbm %s534_s0, 128 }
  0x16   :  { %p365_p8 = scmp.ne.s32.totalorder %s534_s0, %s364_s13  ;;  %p368_p9 = scmp.lt.u32.totalorder %s364_s13, %s534_s0 }
  0x18   :  { %p370_p10 = pnand %p368_p9, %p365_p8 }
  0x1a   :  { %373 = shalt.err (!%p370_p10)
}
  0x1b   :  { %s374_s1 = scalar_lea.vmem %s20_s8, 128  ;;  %p379_p12 = scmp.lt.s32.totalorder %s20_s8, %s20_s8 }
  0x1c   :  { %p375_p11 = scmp.ne.s32.totalorder %s20_s8, %s374_s1  ;;  %p380_p13 = scmp.lt.s32.totalorder %s374_s1, %s374_s1 }
  0x1e   :  { %p381_p0 = por %p380_p13, %p379_p12 }
  0x20   :  { %p382_p1 = pnand %p381_p0, %p375_p11 }
  0x22   :  { %385 = shalt.err (!%p382_p1)
}
  0x23   :  { %22 = dma.hbm_to_vmem [thread:$0]  %s534_s0, 128, %s20_s8, [#allocation3]  }
  0x24   :  { %s386_s22 = scalar_lea.hbm %s537_s3, 1024 }
  0x25   :  { %p387_p2 = scmp.ne.s32.totalorder %s537_s3, %s386_s22  ;;  %p390_p3 = scmp.lt.u32.totalorder %s386_s22, %s537_s3 }
  0x27   :  { %p392_p4 = pnand %p390_p3, %p387_p2 }
  0x29   :  { %395 = shalt.err (!%p392_p4)
}
  0x2a   :  { %s396_s27 = scalar_lea.vmem %s43_s10, 1024  ;;  %p401_p6 = scmp.lt.s32.totalorder %s43_s10, %s43_s10 }
  0x2b   :  { %p397_p5 = scmp.ne.s32.totalorder %s43_s10, %s396_s27  ;;  %p402_p7 = scmp.lt.s32.totalorder %s396_s27, %s396_s27 }
  0x2d   :  { %p403_p8 = por %p402_p7, %p401_p6 }
  0x2f   :  { %p404_p9 = pnand %p403_p8, %p397_p5 }
  0x31   :  { %407 = shalt.err (!%p404_p9)
}
  0x32   :  { %48 = dma.hbm_to_vmem [thread:$0]  %s537_s3, 1024, %s43_s10, [#allocation6], %s437_s28, %s437_s28, %s438_s29  }
  0x33   :  { %430 = dma.done.wait [#allocation3], 128  }
  0x34   :  { %431 = vsyncadd [#allocation3], 4294967168 }
  0x35   :  { %432 = dma.done.wait [#allocation6], 1280  }
  0x36   :  { %433 = vsyncadd [#allocation6], 4294966016  ;;  %v441_v0 = vmov 0.0   ;;  %vm442_vm0 = vmmov 0   ;;  %v328_v1 = vld [vmem:[#allocation5] sm:$0xff]   ;;  %v329_v2 = vld [vmem:[#allocation5 + $0x8] sm:$0xff]  }
  0x37   :  { %292 = vmatprep.subr.bf16.mxu0 %v441_v0  ;;  %296 = vmatprep.mubr.msk.bf16.mxu0 %vm442_vm0, %v441_v0  ;;  %v61_v3 = vld [vmem:[#allocation2] sm:$0xff]  ;;  %v330_v4 = vld [vmem:[#allocation7] sm:$0xff]   ;;  %vm86_vm1 = vcmask 261120   ;;  %v332_v7 = vld [vmem:[#allocation7 + $0x10] sm:$0xff]  }
  0x38   :  { %300 = vmatprep.subr.bf16.mxu1 %v441_v0  ;;  %316 = vmatprep.mubr.msk.bf16.mxu1 %vm442_vm0, %v441_v0  ;;  %v62_v5 = vpack.c.bf16 %v61_v3, %v61_v3  ;;  %v331_v6 = vld [vmem:[#allocation7 + $0x8] sm:$0xff]   ;;  %v333_v8 = vld [vmem:[#allocation7 + $0x18] sm:$0xff]   ;;  %v334_v9 = vld [vmem:[#allocation7 + $0x20] sm:$0xff]  }
  0x39   :  { %293 = vmatpush3.bf16.msra.mxu0 %v328_v1  ;;  %301 = vmatpush3.bf16.msra.mxu1 %v330_v4  ;;  %v335_v10 = vld [vmem:[#allocation7 + $0x28] sm:$0xff]   ;;  %v336_v11 = vld [vmem:[#allocation7 + $0x30] sm:$0xff]   ;;  %v337_v12 = vld [vmem:[#allocation7 + $0x38] sm:$0xff]  }
  0x3a   :  { %294 = vmatprep.subr.bf16.mxu0 %v441_v0  ;;  %302 = vmatprep.subr.bf16.mxu1 %v441_v0  ;;  %v266_v13 = vld [vmem:[%s536_s2] ss:$0 sm:$0xff]  ;;  %s443_s2 = smov [#allocation8]  }
  0x3b   :  { %v270_v21 = vld [vmem:[%s538_s4] ss:$0 sm:$0xff]  ;;  %s256_s7 = sshll.u32 %s443_s2, 4  ;;  %s257_s7 = int_to_ptr.vmem [resolvable:$true] %s256_s7 }
  0x3c   :  { %s408_s8 = scalar_lea.vmem %s257_s7, 128  ;;  %p413_p11 = scmp.lt.s32.totalorder %s257_s7, %s257_s7 }
  0x3d   :  { %295 = vmatpush3.bf16.msra.mxu0 %v329_v2  ;;  %303 = vmatpush3.bf16.msra.mxu1 %v331_v6  ;;  %p409_p10 = scmp.ne.s32.totalorder %s257_s7, %s408_s8  ;;  %p414_p12 = scmp.lt.s32.totalorder %s408_s8, %s408_s8 }
  0x3e   :  { %304 = vmatprep.subr.bf16.mxu1 %v441_v0 }
  0x3f   :  { %p415_p13 = por %p414_p12, %p413_p11 }
  0x40   :  { %297 = vmatmul.mubr.msk.bf16.vlgmr.msra.gmra.mrb[0].mxu0 %vm86_vm1, %v62_v5 }
  0x41   :  { %305 = vmatpush3.bf16.msra.mxu1 %v332_v7  ;;  %p416_p0 = pnand %p415_p13, %p409_p10 }
  0x42   :  { %306 = vmatprep.subr.bf16.mxu1 %v441_v0 }
  0x45   :  { %307 = vmatpush3.bf16.msra.mxu1 %v333_v8 }
  0x46   :  { %308 = vmatprep.subr.bf16.mxu1 %v441_v0 }
  0x49   :  { %309 = vmatpush3.bf16.msra.mxu1 %v334_v9 }
  0x4a   :  { %310 = vmatprep.subr.bf16.mxu1 %v441_v0 }
  0x4d   :  { %311 = vmatpush3.bf16.msra.mxu1 %v335_v10 }
  0x4e   :  { %312 = vmatprep.subr.bf16.mxu1 %v441_v0 }
  0x51   :  { %313 = vmatpush3.bf16.msra.mxu1 %v336_v11 }
  0x52   :  { %314 = vmatprep.subr.bf16.mxu1 %v441_v0 }
  0x55   :  { %315 = vmatpush3.bf16.msra.mxu1 %v337_v12 }
 0x113   :  { %v124_v14 = vpop.f32.mrb[0].mxu0 }
 0x114   :  { %v125_v15 = vadd.f32 %v266_v13, %v124_v14  ;;  %v298_v16 = vpop.f32.mrb[1].mxu0 }
 0x115   :  { %v127_v17 = vpop.f32.mrb[2].mxu0 }
 0x116   :  { %v130_v18 = vmax.f32 %v125_v15, 0.0  ;;  %v299_v19 = vpop.f32.mrb[3].mxu0 }
 0x118   :  { %v131_v20 = vpack.c.bf16 %v130_v18, %v130_v18 }
 0x11a   :  { %317 = vmatmul.mubr.bf16.vlgmr.msra.gmra.mrb[0].mxu1 %v131_v20 }
 0x1ed   :  { %v237_v22 = vpop.f32.mrb[0].mxu1 }
 0x1ee   :  { %v238_v23 = vadd.f32 %v270_v21, %v237_v22  ;;  %v318_v24 = vpop.f32.mrb[1].mxu1 }
 0x1ef   :  { %v240_v25 = vpop.f32.mrb[2].mxu1 }
 0x1f0   :  { %v279_v26 = vmul.f32 -1.442695, %v238_v23  ;;  %v319_v27 = vpop.f32.mrb[3].mxu1 }
 0x1f2   :  { %338 = vpow2.f32 %v279_v26 }
 0x1fc   :  { %v339_v28 = vpop.eup %338 }
 0x1fd   :  { %v246_v29 = vadd.f32 1.0, %v339_v28 }
 0x1ff   :  { %340 = vrcp.f32 %v246_v29 }
 0x209   :  { %v341_v30 = vpop.eup %340 }
 0x20a   :  { %249 = vst [vmem:[#allocation8] sm:$0xff] %v341_v30 }
 0x20b   :  { %419 = shalt.err (!%p416_p0)
}
 0x20c   :  { %s420_s10 = scalar_lea.hbm %s539_s5, 128 }
 0x20d   :  { %p421_p1 = scmp.ne.s32.totalorder %s539_s5, %s420_s10  ;;  %p424_p2 = scmp.lt.u32.totalorder %s420_s10, %s539_s5 }
 0x20f   :  { %p426_p3 = pnand %p424_p2, %p421_p1 }
 0x211   :  { %429 = shalt.err (!%p426_p3)
}
 0x212   :  { %259 = dma.vmem_to_hbm [thread:$0]  %s257_s7, 128, %s539_s5, [#allocation4]  }
 0x213   :  { %434 = dma.done.wait [#allocation4], 128  }
 0x214   :  { %435 = vsyncadd [#allocation4], 4294967168 }
 0x215   :  { %263 = vsyncpa [#allocation3], 1 }
 0x216   :  { %264 = vsyncpa [#allocation6], 1 }
 0x217   :  { %265 = vsyncpa [#allocation4], 1 }

</bundles_post_ra>
